<compile_context>
chip_gen: v7x
topology: tpu7x:2x2x1
jax: 0.10.0
libtpu: 0.0.40
codegen_flags: <defaults>
</compile_context>

<pallas_src>
import jax
import jax.numpy as jnp
from jax.experimental import pallas as pl
from jax.experimental.pallas import tpu as pltpu


def song_classifier_kernel(x_ref, w1_ref, b1_ref, w2_ref, b2_ref, o_ref):
    # Layer 1 on the MXU: cast the x tile to bf16 in-register (cheap VPU pack),
    # f32 accumulate.
    x_bf = x_ref[...].astype(jnp.bfloat16)
    h = jnp.dot(x_bf, w1_ref[...], preferred_element_type=jnp.float32)
    # Bias + ReLU in f32 on the VPU.
    h = jnp.maximum(h + b1_ref[...], 0.0)
    # Layer 2 on the MXU: bf16 activations, f32 accumulate.
    out = jnp.dot(h.astype(jnp.bfloat16), w2_ref[...],
                  preferred_element_type=jnp.float32)
    o_ref[...] = (out + b2_ref[...]).astype(o_ref.dtype)


def _round_up(x, m):
    return ((x + m - 1) // m) * m


def song_classifier_forward(x, w1, b1, w2, b2, *, block_b=1024):
    """x: [B, F], w1: [F, 8], b1: [8] or [1, 8], w2: [8, C], b2: [C] or [1, C].

    Returns f32 logits of shape [B, C].
    """
    B, F = x.shape
    H = w1.shape[1]
    C = w2.shape[1]

    # Batch tile: as large as block_b but never larger than the sublane-padded
    # batch. Batch is zero-padded up to a multiple of TB (zero rows only
    # produce extra garbage logits that are sliced off below).
    TB = min(block_b, _round_up(B, 8))
    BP = _round_up(B, TB)
    x_p = x if BP == B else jnp.pad(x, ((0, BP - B), (0, 0)))

    # Weights are tiny: one-time bf16 cast outside the kernel; biases stay f32.
    w1_bf = w1.astype(jnp.bfloat16)
    w2_bf = w2.astype(jnp.bfloat16)
    b1_f = b1.reshape(1, H).astype(jnp.float32)
    b2_f = b2.reshape(1, C).astype(jnp.float32)

    grid = (BP // TB,)
    out = pl.pallas_call(
        song_classifier_kernel,
        out_shape=jax.ShapeDtypeStruct((BP, C), jnp.float32),
        grid_spec=pltpu.PrefetchScalarGridSpec(
            num_scalar_prefetch=0,
            grid=grid,
            in_specs=[
                pl.BlockSpec((TB, F), lambda i: (i, 0)),  # x tile, pipelined
                pl.BlockSpec((F, H), lambda i: (0, 0)),   # W1, resident
                pl.BlockSpec((1, H), lambda i: (0, 0)),   # b1, resident
                pl.BlockSpec((H, C), lambda i: (0, 0)),   # W2, resident
                pl.BlockSpec((1, C), lambda i: (0, 0)),   # b2, resident
            ],
            out_specs=pl.BlockSpec((TB, C), lambda i: (i, 0)),
        ),
        compiler_params=pltpu.CompilerParams(
            dimension_semantics=("parallel",),
        ),
    )(x_p, w1_bf, b1_f, w2_bf, b2_f)
    return out if BP == B else out[:B]


def init_params(key, n_features, n_classes, hidden=8):
    """Deterministic init mimicking nn.Linear's U(-1/sqrt(fan_in), 1/sqrt(fan_in))."""
    k1, k2, k3, k4 = jax.random.split(key, 4)
    bound1 = 1.0 / jnp.sqrt(jnp.float32(n_features))
    bound2 = 1.0 / jnp.sqrt(jnp.float32(hidden))
    w1 = jax.random.uniform(k1, (n_features, hidden), jnp.float32, -bound1, bound1)
    b1 = jax.random.uniform(k2, (1, hidden), jnp.float32, -bound1, bound1)
    w2 = jax.random.uniform(k3, (hidden, n_classes), jnp.float32, -bound2, bound2)
    b2 = jax.random.uniform(k4, (1, n_classes), jnp.float32, -bound2, bound2)
    return w1, b1, w2, b2


def _reference(x, w1, b1, w2, b2):
    # bf16-matched reference (same cast / accumulate recipe as the kernel).
    x_bf = x.astype(jnp.bfloat16)
    h = jnp.maximum(
        jnp.dot(x_bf, w1.astype(jnp.bfloat16),
                preferred_element_type=jnp.float32) + b1.reshape(1, -1), 0.0)
    return jnp.dot(h.astype(jnp.bfloat16), w2.astype(jnp.bfloat16),
                   preferred_element_type=jnp.float32) + b2.reshape(1, -1)


if __name__ == "__main__":
    n_features = 32
    n_classes = 4

    key = jax.random.PRNGKey(0)
    kx, kp, kx2 = jax.random.split(key, 3)
    w1, b1, w2, b2 = init_params(kp, n_features, n_classes)

    # Case 1: batch divides the tile exactly -> grid=(4,), no padding.
    batch = 512
    x = jax.random.normal(kx, (batch, n_features), jnp.float32)
    out = song_classifier_forward(x, w1, b1, w2, b2, block_b=128)
    out = jax.block_until_ready(out)
    assert out.shape == (batch, n_classes)
    ref = _reference(x, w1, b1, w2, b2)
    assert jnp.allclose(out, ref, atol=1e-2, rtol=1e-2)
    ref_f32 = jnp.maximum(x @ w1 + b1, 0.0) @ w2 + b2
    assert jnp.allclose(out, ref_f32, atol=5e-2, rtol=5e-2)

    # Case 2: ragged batch -> exercises the pad/slice path.
    batch2 = 300
    x2 = jax.random.normal(kx2, (batch2, n_features), jnp.float32)
    out2 = song_classifier_forward(x2, w1, b1, w2, b2, block_b=128)
    out2 = jax.block_until_ready(out2)
    assert out2.shape == (batch2, n_classes)
    ref2 = _reference(x2, w1, b1, w2, b2)
    assert jnp.allclose(out2, ref2, atol=1e-2, rtol=1e-2)

    print("KERNEL_OK")
</pallas_src>

<mosaic_0001>
module attributes {stable_mosaic.version = 11 : i64} {
  func.func @song_classifier_kernel(%arg0: i32, %arg1: memref<128x32xf32, #tpu.memory_space<vmem>>, %arg2: memref<32x8xbf16, #tpu.memory_space<vmem>>, %arg3: memref<1x8xf32, #tpu.memory_space<vmem>>, %arg4: memref<8x4xbf16, #tpu.memory_space<vmem>>, %arg5: memref<1x4xf32, #tpu.memory_space<vmem>>, %arg6: memref<128x4xf32, #tpu.memory_space<vmem>>) attributes {dimension_semantics = [#tpu.dimension_semantics<parallel>], iteration_bounds = array<i64: 4>, scalar_prefetch = 0 : i64, scratch_operands = 0 : i64, tpu.core_type = #tpu.core_type<tc>, window_params = [{transform_indices = @transform_0, window_bounds = array<i64: 128, 32>}, {pipeline_mode = #tpu.pipeline_mode<synchronous>, transform_indices = @transform_1, window_bounds = array<i64: 32, 8>}, {pipeline_mode = #tpu.pipeline_mode<synchronous>, transform_indices = @transform_2, window_bounds = array<i64: 1, 8>}, {pipeline_mode = #tpu.pipeline_mode<synchronous>, transform_indices = @transform_3, window_bounds = array<i64: 8, 4>}, {pipeline_mode = #tpu.pipeline_mode<synchronous>, transform_indices = @transform_4, window_bounds = array<i64: 1, 4>}, {transform_indices = @transform_5, window_bounds = array<i64: 128, 4>}]} {
    %c0 = arith.constant 0 : index
    %c0_0 = arith.constant 0 : index
    %0 = vector.load %arg1[%c0, %c0_0] : memref<128x32xf32, #tpu.memory_space<vmem>>, vector<128x32xf32>
    %1 = arith.truncf %0 : vector<128x32xf32> to vector<128x32xbf16>
    %c0_1 = arith.constant 0 : index
    %c0_2 = arith.constant 0 : index
    %2 = vector.load %arg2[%c0_1, %c0_2] : memref<32x8xbf16, #tpu.memory_space<vmem>>, vector<32x8xbf16>
    %cst = arith.constant dense<0.000000e+00> : vector<128x8xf32>
    %3 = tpu.matmul %1, %2, %cst {dimension_numbers = #tpu.dot_dimension_numbers<[1], [0], [0], [1], [0, 0, 1, 1], [], []>} : vector<128x32xbf16>, vector<32x8xbf16>, vector<128x8xf32> -> vector<128x8xf32>
    %c0_3 = arith.constant 0 : index
    %c0_4 = arith.constant 0 : index
    %4 = vector.load %arg3[%c0_3, %c0_4] : memref<1x8xf32, #tpu.memory_space<vmem>>, vector<1x8xf32>
    %5 = vector.broadcast %4 : vector<1x8xf32> to vector<128x8xf32>
    %6 = arith.addf %3, %5 : vector<128x8xf32>
    %cst_5 = arith.constant 0.000000e+00 : f32
    %7 = vector.broadcast %cst_5 : f32 to vector<128x8xf32>
    %8 = arith.maximumf %6, %7 : vector<128x8xf32>
    %9 = arith.truncf %8 : vector<128x8xf32> to vector<128x8xbf16>
    %c0_6 = arith.constant 0 : index
    %c0_7 = arith.constant 0 : index
    %10 = vector.load %arg4[%c0_6, %c0_7] : memref<8x4xbf16, #tpu.memory_space<vmem>>, vector<8x4xbf16>
    %cst_8 = arith.constant dense<0.000000e+00> : vector<128x4xf32>
    %11 = tpu.matmul %9, %10, %cst_8 {dimension_numbers = #tpu.dot_dimension_numbers<[1], [0], [0], [1], [0, 0, 1, 1], [], []>} : vector<128x8xbf16>, vector<8x4xbf16>, vector<128x4xf32> -> vector<128x4xf32>
    %c0_9 = arith.constant 0 : index
    %c0_10 = arith.constant 0 : index
    %12 = vector.load %arg5[%c0_9, %c0_10] : memref<1x4xf32, #tpu.memory_space<vmem>>, vector<1x4xf32>
    %13 = vector.broadcast %12 : vector<1x4xf32> to vector<128x4xf32>
    %14 = arith.addf %11, %13 : vector<128x4xf32>
    %c0_11 = arith.constant 0 : index
    %c0_12 = arith.constant 0 : index
    %15 = vector.load %arg6[%c0_11, %c0_12] : memref<128x4xf32, #tpu.memory_space<vmem>>, vector<128x4xf32>
    tpu.vector_store %arg6[%c0_11, %c0_12], %14 {strides = array<i32>} : memref<128x4xf32, #tpu.memory_space<vmem>>, vector<128x4xf32>,
    return
  }
  func.func @transform_0(%arg0: i32) -> (i32, i32) {
    %c0_i32 = arith.constant 0 : i32
    %c0_i32_0 = arith.constant 0 : i32
    return %arg0, %c0_i32 : i32, i32
  }
  func.func @transform_1(%arg0: i32) -> (i32, i32) {
    %c0_i32 = arith.constant 0 : i32
    %c0_i32_0 = arith.constant 0 : i32
    %c0_i32_1 = arith.constant 0 : i32
    return %c0_i32, %c0_i32_0 : i32, i32
  }
  func.func @transform_2(%arg0: i32) -> (i32, i32) {
    %c0_i32 = arith.constant 0 : i32
    %c0_i32_0 = arith.constant 0 : i32
    %c0_i32_1 = arith.constant 0 : i32
    return %c0_i32, %c0_i32_0 : i32, i32
  }
  func.func @transform_3(%arg0: i32) -> (i32, i32) {
    %c0_i32 = arith.constant 0 : i32
    %c0_i32_0 = arith.constant 0 : i32
    %c0_i32_1 = arith.constant 0 : i32
    return %c0_i32, %c0_i32_0 : i32, i32
  }
  func.func @transform_4(%arg0: i32) -> (i32, i32) {
    %c0_i32 = arith.constant 0 : i32
    %c0_i32_0 = arith.constant 0 : i32
    %c0_i32_1 = arith.constant 0 : i32
    return %c0_i32, %c0_i32_0 : i32, i32
  }
  func.func @transform_5(%arg0: i32) -> (i32, i32) {
    %c0_i32 = arith.constant 0 : i32
    %c0_i32_0 = arith.constant 0 : i32
    return %arg0, %c0_i32 : i32, i32
  }
}

</mosaic_0001>

<bundles_post_ra>
// kernel: tpu_custom_call.1
= control target key start
LH: loop header
LB: loop body
LE: loop exit
PB: predicated region body
PF: predicated region fallthrough
CT: control target
= control target key end

     0   :  { %s766_s18 = smov 0   ;;  %s873_s0 = inlined_call_operand.vmem [shape: f32[512,32], index: 0, kind: input, shape index: {}]   ;;  %s874_s1 = inlined_call_operand.vmem [shape: bf16[32,8], index: 1, kind: input, shape index: {}]   ;;  %s875_s2 = inlined_call_operand.vmem [shape: f32[1,8], index: 2, kind: input, shape index: {}]   ;;  %s876_s3 = inlined_call_operand.vmem [shape: bf16[8,4], index: 3, kind: input, shape index: {}]   ;;  %s877_s4 = inlined_call_operand.vmem [shape: f32[1,4], index: 4, kind: input, shape index: {}]   ;;  %s878_s5 = inlined_call_operand.vmem [shape: f32[512,4], index: 5, kind: output, shape index: {}]  }
   0x1 LB: > { %s629_s19 = sadd.s32 4294967295, %s734_s18   ;;  %p633_p0 = scmp.ge.s32.totalorder %s734_s18, 1  ;;  %s734_s18 = sphi %s766_s18, %s15_s18  }
   0x2   : > { %p188_p1 = scmp.lt.s32.totalorder %s734_s18, 5 }
   0x4   : > { %p189_p2 = pnand %p633_p0, %p188_p1 }
   0x5   : > { %v726_v0 = vld [vmem:[%s874_s1] sm:$0xff] (!%p189_p2)   ;;  %s634_s22 = sshll.u32 (!%p189_p2), %s629_s19, 4  ;;  %v727_v1 = vld [vmem:[%s874_s1 + $0x8] sm:$0xff] (!%p189_p2)   ;;  %vm276_vm0 = vcmask (!%p189_p2), 261120   ;;  %vm455_vm1 = vcmask (!%p189_p2), 1043456   ;;  %vm430_vm2 = vcmask (!%p189_p2), 64512  }
   0x6   : > { %192 = sbr.rel (%p189_p2) target bundleno = 484 (0x1e4), region = 40  ;;  %p217_p3 = scmp.lt.s32.totalorder (!%p189_p2), %s634_s22, 63  ;;  %679 = vmatprep.subr.bf16.mxu0 (!%p189_p2), %v726_v0  ;;  %v422_v26 = vld [vmem:[%s876_s3] sm:$0xf] (!%p189_p2)  ;;  %vm556_vm3 = vcmask (!%p189_p2), 31744  }
   0x7   : > { %680 = vmatpush3.bf16.msra.mxu0 (!%p189_p2), %v726_v0  ;;  %717 = vmatprep.subr.msk.bf16.mxu1 (!%p189_p2), %vm455_vm1, %v422_v26  ;;  %v457_v27 = vsel (!%p189_p2), %vm455_vm1, %v422_v26, 0  ;;  %v638_v28 = vld [vmem:[%s875_s2] ss:$0 sm:$0xff] (!%p189_p2) }
   0x8   : > { %681 = vmatprep.subr.bf16.mxu0 (!%p189_p2), %v727_v1  ;;  %700 = vmatpush3.bf16.msra.mxu1 (!%p189_p2), %v457_v27 }
   0xb   : > { %682 = vmatpush3.bf16.msra.mxu0 (!%p189_p2), %v727_v1 }
   0xd   : > { %s880_s22 = smov (!%p217_p3, %s634_s22), 63 }
   0xe   : > { %s635_s25 = sshll.u32 %s880_s22, 3 }
   0xf   : > { %s788_s28 = scalar_lea.vmem %s873_s0, %s635_s25  ;;  %s836_s12 = scalar_lea.vmem %s878_s5, %s635_s25 }
  0x10   : > { %v229_v2 = vld [vmem:[%s788_s28] sm:$0xff]  ;;  %v230_v3 = vld [vmem:[%s788_s28 + $0x8] sm:$0xff]  ;;  %v231_v4 = vld [vmem:[%s788_s28 + $0x10] sm:$0xff] }
  0x11   : > { %v245_v5 = vpack.c.bf16 %v230_v3, %v229_v2  ;;  %v232_v6 = vld [vmem:[%s788_s28 + $0x18] sm:$0xff]  ;;  %v233_v7 = vld [vmem:[%s788_s28 + $0x20] sm:$0xff]  ;;  %v234_v8 = vld [vmem:[%s788_s28 + $0x28] sm:$0xff] }
  0x12   : > { %v246_v9 = vpack.c.bf16 %v232_v6, %v231_v4  ;;  %v247_v10 = vpack.c.bf16 %v234_v8, %v233_v7  ;;  %v235_v11 = vld [vmem:[%s788_s28 + $0x30] sm:$0xff]  ;;  %v236_v12 = vld [vmem:[%s788_s28 + $0x38] sm:$0xff]  ;;  %v237_v13 = vld [vmem:[%s788_s28 + $0x40] sm:$0xff] }
  0x13   : > { %683 = vmatprep.mubr.msk.bf16.mxu0 %vm276_vm0, %v245_v5  ;;  %v238_v14 = vld [vmem:[%s788_s28 + $0x48] sm:$0xff]  ;;  %v248_v15 = vpack.c.bf16 %v236_v12, %v235_v11  ;;  %v239_v17 = vld [vmem:[%s788_s28 + $0x50] sm:$0xff]  ;;  %v240_v18 = vld [vmem:[%s788_s28 + $0x58] sm:$0xff] }
  0x14   : > { %684 = vmatmul.mubr.msk.bf16.vlgmr.msra.gmra.mrb[0].mxu0 %vm276_vm0, %v246_v9  ;;  %v249_v16 = vpack.c.bf16 %v238_v14, %v237_v13  ;;  %v241_v19 = vld [vmem:[%s788_s28 + $0x60] sm:$0xff]  ;;  %v242_v20 = vld [vmem:[%s788_s28 + $0x68] sm:$0xff]  ;;  %v250_v21 = vpack.c.bf16 %v240_v18, %v239_v17  ;;  %v243_v23 = vld [vmem:[%s788_s28 + $0x70] sm:$0xff] }
  0x15   : > { %687 = vmatprep.mubr.msk.bf16.mxu0 %vm276_vm0, %v247_v10  ;;  %v251_v22 = vpack.c.bf16 %v242_v20, %v241_v19  ;;  %v244_v24 = vld [vmem:[%s788_s28 + $0x78] sm:$0xff] }
  0x16   : > { %v252_v25 = vpack.c.bf16 %v244_v24, %v243_v23 }
  0x1c   : > { %688 = vmatmul.mubr.msk.bf16.gmra.mrb[4].mxu0 %vm276_vm0, %v248_v15 }
  0x1d   : > { %691 = vmatprep.mubr.msk.bf16.mxu0 %vm276_vm0, %v249_v16 }
  0x24   : > { %692 = vmatmul.mubr.msk.bf16.gmra.mrb[8].mxu0 %vm276_vm0, %v250_v21  ;;  %v649_v21 = vld [vmem:[%s877_s4] ss:$0 sm:$0xff] }
  0x25   : > { %695 = vmatprep.mubr.msk.bf16.mxu0 %vm276_vm0, %v251_v22 }
  0x2c   : > { %696 = vmatmul.mubr.msk.bf16.gmra.mrb[12].mxu0 %vm276_vm0, %v252_v25 }
  0xe7   : > { %v685_v29 = vpop.f32.mrb[0].mxu0 }
  0xe8   : > { %v344_v30 = vadd.f32 %v685_v29, %v638_v28  ;;  %v335_v31 = vpop.f32.mrb[1].mxu0 }
  0xe9   : > { %v336_v32 = vadd.f32 %v638_v28, %v335_v31  ;;  %v686_v33 = vpop.f32.mrb[2].mxu0 }
  0xea   : > { %v347_v34 = vadd.f32 %v686_v33, %v638_v28  ;;  %v338_v35 = vpop.f32.mrb[3].mxu0  ;;  %v400_v37 = vmax.f32 %v344_v30, 0.0 }
  0xeb   : > { %v339_v36 = vadd.f32 %v638_v28, %v338_v35  ;;  %v398_v39 = vmax.f32 %v336_v32, 0.0 }
  0xec   : > { %v401_v38 = vmax.f32 %v347_v34, 0.0 }
  0xed   : > { %v399_v40 = vmax.f32 %v339_v36, 0.0 }
  0xee   : > { %v415_v41 = vpack.c.bf16 %v401_v38, %v400_v37 }
  0xef   : > { %v689_v42 = vpop.f32.mrb[4].mxu0  ;;  %v414_v43 = vpack.c.bf16 %v399_v40, %v398_v39 }
  0xf0   : > { %v360_v44 = vadd.f32 %v689_v42, %v638_v28  ;;  %v351_v45 = vpop.f32.mrb[5].mxu0 }
  0xf1   : > { %v352_v46 = vadd.f32 %v638_v28, %v351_v45  ;;  %v690_v47 = vpop.f32.mrb[6].mxu0  ;;  %701 = vmatprep.mubr.msk.bf16.mxu1 %vm430_vm2, %v414_v43 }
  0xf2   : > { %v363_v48 = vadd.f32 %v690_v47, %v638_v28  ;;  %v354_v49 = vpop.f32.mrb[7].mxu0  ;;  %702 = vmatmul.mubr.msk.bf16.vlgmr.msra.gmra.mrb[0].mxu1 %vm430_vm2, %v415_v41  ;;  %v404_v51 = vmax.f32 %v360_v44, 0.0 }
  0xf3   : > { %v355_v50 = vadd.f32 %v638_v28, %v354_v49  ;;  %v402_v53 = vmax.f32 %v352_v46, 0.0 }
  0xf4   : > { %v405_v52 = vmax.f32 %v363_v48, 0.0 }
  0xf5   : > { %v403_v54 = vmax.f32 %v355_v50, 0.0 }
  0xf6   : > { %v417_v55 = vpack.c.bf16 %v405_v52, %v404_v51 }
  0xf7   : > { %v416_v56 = vpack.c.bf16 %v403_v54, %v402_v53  ;;  %v693_v57 = vpop.f32.mrb[8].mxu0 }
  0xf8   : > { %v376_v58 = vadd.f32 %v693_v57, %v638_v28  ;;  %v367_v59 = vpop.f32.mrb[9].mxu0 }
  0xf9   : > { %v368_v60 = vadd.f32 %v638_v28, %v367_v59  ;;  %v694_v61 = vpop.f32.mrb[10].mxu0  ;;  %705 = vmatprep.mubr.msk.bf16.mxu1 %vm430_vm2, %v416_v56 }
  0xfa   : > { %v379_v62 = vadd.f32 %v694_v61, %v638_v28  ;;  %v370_v63 = vpop.f32.mrb[11].mxu0  ;;  %706 = vmatmul.mubr.msk.bf16.gmra.mrb[4].mxu1 %vm430_vm2, %v417_v55  ;;  %v408_v1 = vmax.f32 %v376_v58, 0.0 }
  0xfb   : > { %v371_v0 = vadd.f32 %v638_v28, %v370_v63  ;;  %v406_v3 = vmax.f32 %v368_v60, 0.0 }
  0xfc   : > { %v409_v2 = vmax.f32 %v379_v62, 0.0 }
  0xfd   : > { %v407_v4 = vmax.f32 %v371_v0, 0.0 }
  0xfe   : > { %v419_v5 = vpack.c.bf16 %v409_v2, %v408_v1 }
  0xff   : > { %v418_v6 = vpack.c.bf16 %v407_v4, %v406_v3  ;;  %v697_v7 = vpop.f32.mrb[12].mxu0 }
 0x100   : > { %v392_v8 = vadd.f32 %v697_v7, %v638_v28  ;;  %v383_v9 = vpop.f32.mrb[13].mxu0 }
 0x101   : > { %v384_v10 = vadd.f32 %v638_v28, %v383_v9  ;;  %v698_v11 = vpop.f32.mrb[14].mxu0  ;;  %709 = vmatprep.mubr.msk.bf16.mxu1 %vm430_vm2, %v418_v6 }
 0x102   : > { %v395_v12 = vadd.f32 %v698_v11, %v638_v28  ;;  %v386_v13 = vpop.f32.mrb[15].mxu0  ;;  %710 = vmatmul.mubr.msk.bf16.gmra.mrb[8].mxu1 %vm430_vm2, %v419_v5  ;;  %v412_v15 = vmax.f32 %v392_v8, 0.0 }
 0x103   : > { %v387_v14 = vadd.f32 %v638_v28, %v386_v13  ;;  %v410_v17 = vmax.f32 %v384_v10, 0.0 }
 0x104   : > { %v413_v16 = vmax.f32 %v395_v12, 0.0 }
 0x105   : > { %v411_v18 = vmax.f32 %v387_v14, 0.0 }
 0x106   : > { %v421_v19 = vpack.c.bf16 %v413_v16, %v412_v15 }
 0x107   : > { %v420_v20 = vpack.c.bf16 %v411_v18, %v410_v17 }
 0x109   : > { %713 = vmatprep.mubr.msk.bf16.mxu1 %vm430_vm2, %v420_v20 }
 0x10a   : > { %714 = vmatmul.mubr.msk.bf16.gmra.mrb[12].mxu1 %vm430_vm2, %v421_v19 }
 0x1c5   : > { %v703_v22 = vpop.f32.mrb[0].mxu1 }
 0x1c6   : > { %v502_v23 = vadd.f32 %v703_v22, %v649_v21  ;;  %v493_v24 = vpop.f32.mrb[1].mxu1 }
 0x1c7   : > { %v494_v25 = vadd.f32 %v649_v21, %v493_v24  ;;  %v704_v26 = vpop.f32.mrb[2].mxu1 }
 0x1c8   : > { %559 = vst.msk [vmem:[%s836_s12 + $0x10] sm:$0xff] %vm556_vm3, %v502_v23  ;;  %v505_v27 = vadd.f32 %v704_v26, %v649_v21  ;;  %v496_v28 = vpop.f32.mrb[3].mxu1 }
 0x1c9   : > { %557 = vst.msk [vmem:[%s836_s12] sm:$0xff] %vm556_vm3, %v494_v25  ;;  %v497_v29 = vadd.f32 %v649_v21, %v496_v28 }
 0x1ca   : > { %560 = vst.msk [vmem:[%s836_s12 + $0x18] sm:$0xff] %vm556_vm3, %v505_v27 }
 0x1cb   : > { %558 = vst.msk [vmem:[%s836_s12 + $0x8] sm:$0xff] %vm556_vm3, %v497_v29 }
 0x1cd   : > { %v707_v30 = vpop.f32.mrb[4].mxu1 }
 0x1ce   : > { %v518_v31 = vadd.f32 %v707_v30, %v649_v21  ;;  %v509_v32 = vpop.f32.mrb[5].mxu1 }
 0x1cf   : > { %v510_v33 = vadd.f32 %v649_v21, %v509_v32  ;;  %v708_v34 = vpop.f32.mrb[6].mxu1 }
 0x1d0   : > { %563 = vst.msk [vmem:[%s836_s12 + $0x30] sm:$0xff] %vm556_vm3, %v518_v31  ;;  %v521_v35 = vadd.f32 %v708_v34, %v649_v21  ;;  %v512_v36 = vpop.f32.mrb[7].mxu1 }
 0x1d1   : > { %561 = vst.msk [vmem:[%s836_s12 + $0x20] sm:$0xff] %vm556_vm3, %v510_v33  ;;  %v513_v37 = vadd.f32 %v649_v21, %v512_v36 }
 0x1d2   : > { %564 = vst.msk [vmem:[%s836_s12 + $0x38] sm:$0xff] %vm556_vm3, %v521_v35 }
 0x1d3   : > { %562 = vst.msk [vmem:[%s836_s12 + $0x28] sm:$0xff] %vm556_vm3, %v513_v37 }
 0x1d5   : > { %v711_v38 = vpop.f32.mrb[8].mxu1 }
 0x1d6   : > { %v534_v39 = vadd.f32 %v711_v38, %v649_v21  ;;  %v525_v40 = vpop.f32.mrb[9].mxu1 }
 0x1d7   : > { %v526_v41 = vadd.f32 %v649_v21, %v525_v40  ;;  %v712_v42 = vpop.f32.mrb[10].mxu1 }
 0x1d8   : > { %567 = vst.msk [vmem:[%s836_s12 + $0x50] sm:$0xff] %vm556_vm3, %v534_v39  ;;  %v537_v43 = vadd.f32 %v712_v42, %v649_v21  ;;  %v528_v44 = vpop.f32.mrb[11].mxu1 }
 0x1d9   : > { %565 = vst.msk [vmem:[%s836_s12 + $0x40] sm:$0xff] %vm556_vm3, %v526_v41  ;;  %v529_v45 = vadd.f32 %v649_v21, %v528_v44 }
 0x1da   : > { %568 = vst.msk [vmem:[%s836_s12 + $0x58] sm:$0xff] %vm556_vm3, %v537_v43 }
 0x1db   : > { %566 = vst.msk [vmem:[%s836_s12 + $0x48] sm:$0xff] %vm556_vm3, %v529_v45 }
 0x1dd   : > { %v715_v46 = vpop.f32.mrb[12].mxu1 }
 0x1de   : > { %v550_v47 = vadd.f32 %v715_v46, %v649_v21  ;;  %v541_v48 = vpop.f32.mrb[13].mxu1 }
 0x1df   : > { %v542_v49 = vadd.f32 %v649_v21, %v541_v48  ;;  %v716_v50 = vpop.f32.mrb[14].mxu1 }
 0x1e0   : > { %571 = vst.msk [vmem:[%s836_s12 + $0x70] sm:$0xff] %vm556_vm3, %v550_v47  ;;  %v553_v51 = vadd.f32 %v716_v50, %v649_v21  ;;  %v544_v52 = vpop.f32.mrb[15].mxu1 }
 0x1e1   : > { %569 = vst.msk [vmem:[%s836_s12 + $0x60] sm:$0xff] %vm556_vm3, %v542_v49  ;;  %v545_v53 = vadd.f32 %v649_v21, %v544_v52 }
 0x1e2   : > { %572 = vst.msk [vmem:[%s836_s12 + $0x78] sm:$0xff] %vm556_vm3, %v553_v51 }
 0x1e3   : > { %570 = vst.msk [vmem:[%s836_s12 + $0x68] sm:$0xff] %vm556_vm3, %v545_v53 }
 0x1e4 PF: > { %s15_s18 = sadd.s32 1, %s734_s18  }
 0x1e5   : > { %p12_p4 = scmp.ge.s32.totalorder %s15_s18, 6  }
 0x1e7   :  { %14 = sbr.rel (!%p12_p4) target bundleno = 1 (0x1), region = 70 }

</bundles_post_ra>
